<compile_context>
chip_gen: v6e
topology: v6e:2x2x1
jax: 0.10.0
libtpu: 0.0.40
codegen_flags: <defaults>
</compile_context>

<pallas_src>
import functools

import jax
import jax.numpy as jnp
import numpy as np
from jax.experimental import pallas as pl
from jax.experimental.pallas import tpu as pltpu

_NEG_SENTINEL = -1.0e4        # padded batch columns: logit=-1e4, label=0 -> exactly 0 contribution
_TARGET_TILE_BYTES = 1 << 20  # ~1 MiB per input per pipeline buffer


def _round_up(x, m):
    return ((x + m - 1) // m) * m


def _cb_focal_kernel(logits_ref, labels_ref, weights_ref, out_ref, *, alpha, gamma):
    """One batch tile: logits/labels are (C, TB); weights is (C, 1); out is (1, 8, 128)."""
    x = logits_ref[...].astype(jnp.float32)
    t = labels_ref[...].astype(jnp.float32)
    w = weights_ref[...].astype(jnp.float32)

    # One shared exp for sigmoid and the stable BCE-with-logits form.
    e = jnp.exp(-jnp.abs(x))                        # exp(-|x|)          (EUP)
    inv = pl.reciprocal(1.0 + e, approx=True)       # 1 / (1 + e)        (EUP, approx)
    pred = jnp.where(x >= 0.0, inv, e * inv)        # sigmoid(x)
    ce = jnp.maximum(x, 0.0) - x * t + jnp.log1p(e)  # BCE-with-logits, reduction='none'

    alpha_t = t * alpha + (1.0 - t) * (1.0 - alpha)
    pt = jnp.where(t == 1.0, pred, 1.0 - pred)
    om = 1.0 - pt

    g = float(gamma)
    if g == 2.0:
        mod = om * om                               # VALU multiply instead of exp/log pow
    elif g == 1.0:
        mod = om
    elif g == float(int(g)) and g > 0:
        mod = om
        for _ in range(int(g) - 1):
            mod = mod * om
    else:
        mod = om ** g                               # general float gamma

    focal = alpha_t * mod * ce
    partial = jnp.sum(w * focal)                    # class-balanced weight (broadcast) + reduce

    # Per-tile partial sum, written as a lane/sublane-aligned (1, 8, 128) block.
    out_ref[...] = jnp.zeros(out_ref.shape, jnp.float32) + partial


def class_balanced_loss(pred_logits, labels, cb_weights, *, alpha, gamma, lane_tile=None):
    """pred_logits, labels: [B, C]; cb_weights: [C]. Returns scalar f32 loss (sum)."""
    # TODO(synk): only the integrated_sigmoid=True path of FocalLoss is implemented.
    B, C = pred_logits.shape

    itemsize = int(pred_logits.dtype.itemsize)
    if lane_tile is None:
        max_lanes = max(128, (_TARGET_TILE_BYTES // max(1, C * itemsize)) // 128 * 128)
        lane_tile = min(_round_up(B, 128), max_lanes)
    assert lane_tile % 128 == 0 and lane_tile > 0
    num_tiles = pl.cdiv(B, lane_tile)
    b_pad = num_tiles * lane_tile

    # classes -> sublanes, batch -> lanes. Pad batch with a zero-contribution sentinel.
    x_t = jnp.pad(pred_logits.T, ((0, 0), (0, b_pad - B)), constant_values=_NEG_SENTINEL)
    t_t = jnp.pad(labels.T, ((0, 0), (0, b_pad - B)), constant_values=0)
    w2d = cb_weights.reshape(C, 1).astype(jnp.float32)

    kernel = functools.partial(_cb_focal_kernel, alpha=float(alpha), gamma=float(gamma))

    partials = pl.pallas_call(
        kernel,
        grid=(num_tiles,),
        in_specs=[
            pl.BlockSpec((C, lane_tile), lambda i: (0, i)),   # logits tile
            pl.BlockSpec((C, lane_tile), lambda i: (0, i)),   # labels tile
            pl.BlockSpec((C, 1), lambda i: (0, 0)),           # class-balanced weights (resident)
        ],
        out_specs=pl.BlockSpec((1, 8, 128), lambda i: (i, 0, 0)),
        out_shape=jax.ShapeDtypeStruct((num_tiles, 8, 128), jnp.float32),
        compiler_params=pltpu.CompilerParams(dimension_semantics=("parallel",)),
    )(x_t, t_t, w2d)

    return jnp.sum(partials[:, 0, 0])


def make_cb_weights(samples_per_class, numb_of_classes, beta):
    """Deterministic class-balanced weights, same math as the PyTorch __init__."""
    effective_num = 1.0 - np.power(beta, samples_per_class)
    weights = (1.0 - beta) / np.array(effective_num)
    weights = weights / np.sum(weights) * numb_of_classes
    return jnp.asarray(weights, dtype=jnp.float32)


def _reference(pred_logits, labels, cb_weights, alpha, gamma):
    x = pred_logits.astype(jnp.float32)
    t = labels.astype(jnp.float32)
    pred = jax.nn.sigmoid(x)
    ce = jnp.maximum(x, 0.0) - x * t + jnp.log1p(jnp.exp(-jnp.abs(x)))
    alpha_t = t * alpha + (1.0 - t) * (1.0 - alpha)
    pt = jnp.where(t == 1.0, pred, 1.0 - pred)
    focal = alpha_t * (1.0 - pt) ** gamma * ce
    return jnp.sum(cb_weights[None, :] * focal)


if __name__ == "__main__":
    # Hyperparameters (ClassBalancedLoss.__init__ args)
    numb_of_classes = 4
    samples_per_class = [10, 20, 30, 5]
    beta = 0.999
    alpha = 0.25
    gamma = 2.0

    cb_weights = make_cb_weights(samples_per_class, numb_of_classes, beta)

    key = jax.random.PRNGKey(0)
    k1, k2, k3, k4 = jax.random.split(key, 4)

    # Small deterministic inputs matching the module's multi-label use: batch=8, classes=4.
    B, C = 8, numb_of_classes
    pred_logits = jax.random.normal(k1, (B, C), dtype=jnp.float32)
    labels = jax.random.bernoulli(k2, p=0.5, shape=(B, C)).astype(jnp.float32)

    loss = class_balanced_loss(pred_logits, labels, cb_weights, alpha=alpha, gamma=gamma)
    loss = jax.block_until_ready(loss)
    ref = _reference(pred_logits, labels, cb_weights, alpha, gamma)
    assert np.allclose(np.asarray(loss), np.asarray(ref), rtol=2e-3, atol=1e-3), (loss, ref)

    # Exercise the multi-tile + batch-padding path (3 tiles of 128 lanes, 84 padded columns).
    B2 = 300
    logits2 = jax.random.normal(k3, (B2, C), dtype=jnp.float32)
    labels2 = jax.random.bernoulli(k4, p=0.5, shape=(B2, C)).astype(jnp.float32)
    loss2 = class_balanced_loss(logits2, labels2, cb_weights, alpha=alpha, gamma=gamma,
                                lane_tile=128)
    loss2 = jax.block_until_ready(loss2)
    ref2 = _reference(logits2, labels2, cb_weights, alpha, gamma)
    assert np.allclose(np.asarray(loss2), np.asarray(ref2), rtol=2e-3, atol=1e-2), (loss2, ref2)

    print("KERNEL_OK")
</pallas_src>

<mosaic_0001>
module attributes {stable_mosaic.version = 11 : i64} {
  func.func @_cb_focal_kernel(%arg0: i32, %arg1: memref<4x128xf32, #tpu.memory_space<vmem>>, %arg2: memref<4x128xf32, #tpu.memory_space<vmem>>, %arg3: memref<4x1xf32, #tpu.memory_space<vmem>>, %arg4: memref<1x8x128xf32, #tpu.memory_space<vmem>>) attributes {dimension_semantics = [#tpu.dimension_semantics<parallel>], iteration_bounds = array<i64: 1>, scalar_prefetch = 0 : i64, scratch_operands = 0 : i64, tpu.core_type = #tpu.core_type<tc>, window_params = [{transform_indices = @transform_0, window_bounds = array<i64: 4, 128>}, {transform_indices = @transform_1, window_bounds = array<i64: 4, 128>}, {pipeline_mode = #tpu.pipeline_mode<synchronous>, transform_indices = @transform_2, window_bounds = array<i64: 4, 1>}, {transform_indices = @transform_3, window_bounds = array<i64: 1, 8, 128>}]} {
    %c0 = arith.constant 0 : index
    %c0_0 = arith.constant 0 : index
    %0 = vector.load %arg1[%c0, %c0_0] : memref<4x128xf32, #tpu.memory_space<vmem>>, vector<4x128xf32>
    %c0_1 = arith.constant 0 : index
    %c0_2 = arith.constant 0 : index
    %1 = vector.load %arg2[%c0_1, %c0_2] : memref<4x128xf32, #tpu.memory_space<vmem>>, vector<4x128xf32>
    %c0_3 = arith.constant 0 : index
    %c0_4 = arith.constant 0 : index
    %2 = vector.load %arg3[%c0_3, %c0_4] : memref<4x1xf32, #tpu.memory_space<vmem>>, vector<4x1xf32>
    %3 = math.absf %0 : vector<4x128xf32>
    %cst = arith.constant 0.000000e+00 : f32
    %4 = vector.broadcast %cst : f32 to vector<4x128xf32>
    %5 = arith.subf %4, %3 : vector<4x128xf32>
    %6 = math.exp %5 : vector<4x128xf32>
    %cst_5 = arith.constant 1.000000e+00 : f32
    %7 = vector.broadcast %cst_5 : f32 to vector<4x128xf32>
    %8 = arith.addf %7, %6 : vector<4x128xf32>
    %9 = tpu.reciprocal %8 {approx = true} : vector<4x128xf32> -> vector<4x128xf32>
    %cst_6 = arith.constant 0.000000e+00 : f32
    %10 = vector.broadcast %cst_6 : f32 to vector<4x128xf32>
    %11 = arith.cmpf oge, %0, %10 : vector<4x128xf32>
    %12 = arith.mulf %6, %9 : vector<4x128xf32>
    %13 = arith.select %11, %9, %12 : vector<4x128xi1>, vector<4x128xf32>
    %cst_7 = arith.constant 0.000000e+00 : f32
    %14 = vector.broadcast %cst_7 : f32 to vector<4x128xf32>
    %15 = arith.maximumf %0, %14 : vector<4x128xf32>
    %16 = arith.mulf %0, %1 : vector<4x128xf32>
    %17 = arith.subf %15, %16 : vector<4x128xf32>
    %18 = math.log1p %6 : vector<4x128xf32>
    %19 = arith.addf %17, %18 : vector<4x128xf32>
    %cst_8 = arith.constant 2.500000e-01 : f32
    %20 = vector.broadcast %cst_8 : f32 to vector<4x128xf32>
    %21 = arith.mulf %1, %20 : vector<4x128xf32>
    %cst_9 = arith.constant 1.000000e+00 : f32
    %22 = vector.broadcast %cst_9 : f32 to vector<4x128xf32>
    %23 = arith.subf %22, %1 : vector<4x128xf32>
    %cst_10 = arith.constant 7.500000e-01 : f32
    %24 = vector.broadcast %cst_10 : f32 to vector<4x128xf32>
    %25 = arith.mulf %23, %24 : vector<4x128xf32>
    %26 = arith.addf %21, %25 : vector<4x128xf32>
    %cst_11 = arith.constant 1.000000e+00 : f32
    %27 = vector.broadcast %cst_11 : f32 to vector<4x128xf32>
    %28 = arith.cmpf oeq, %1, %27 : vector<4x128xf32>
    %cst_12 = arith.constant 1.000000e+00 : f32
    %29 = vector.broadcast %cst_12 : f32 to vector<4x128xf32>
    %30 = arith.subf %29, %13 : vector<4x128xf32>
    %31 = arith.select %28, %13, %30 : vector<4x128xi1>, vector<4x128xf32>
    %cst_13 = arith.constant 1.000000e+00 : f32
    %32 = vector.broadcast %cst_13 : f32 to vector<4x128xf32>
    %33 = arith.subf %32, %31 : vector<4x128xf32>
    %34 = arith.mulf %33, %33 : vector<4x128xf32>
    %35 = arith.mulf %26, %34 : vector<4x128xf32>
    %36 = arith.mulf %35, %19 : vector<4x128xf32>
    %37 = vector.broadcast %2 : vector<4x1xf32> to vector<4x128xf32>
    %38 = arith.mulf %37, %36 : vector<4x128xf32>
    %39 = vector.shape_cast %38 : vector<4x128xf32> to vector<1x4x128xf32>
    %cst_14 = arith.constant dense<0.000000e+00> : vector<1xf32>
    %40 = vector.multi_reduction <add>, %39, %cst_14 [1, 2] : vector<1x4x128xf32> to vector<1xf32>
    %41 = vector.shape_cast %40 : vector<1xf32> to vector<1x1x1xf32>
    %42 = vector.extract %41[0, 0, 0] : f32 from vector<1x1x1xf32>
    %cst_15 = arith.constant 0.000000e+00 : f32
    %43 = vector.broadcast %cst_15 : f32 to vector<1x8x128xf32>
    %44 = vector.broadcast %42 : f32 to vector<1x8x128xf32>
    %45 = arith.addf %43, %44 : vector<1x8x128xf32>
    %c0_16 = arith.constant 0 : index
    %c0_17 = arith.constant 0 : index
    %c0_18 = arith.constant 0 : index
    %46 = vector.load %arg4[%c0_16, %c0_17, %c0_18] : memref<1x8x128xf32, #tpu.memory_space<vmem>>, vector<1x8x128xf32>
    tpu.vector_store %arg4[%c0_16, %c0_17, %c0_18], %45 {strides = array<i32>} : memref<1x8x128xf32, #tpu.memory_space<vmem>>, vector<1x8x128xf32>,
    return
  }
  func.func @transform_0(%arg0: i32) -> (i32, i32) {
    %c0_i32 = arith.constant 0 : i32
    %c0_i32_0 = arith.constant 0 : i32
    return %c0_i32, %arg0 : i32, i32
  }
  func.func @transform_1(%arg0: i32) -> (i32, i32) {
    %c0_i32 = arith.constant 0 : i32
    %c0_i32_0 = arith.constant 0 : i32
    return %c0_i32, %arg0 : i32, i32
  }
  func.func @transform_2(%arg0: i32) -> (i32, i32) {
    %c0_i32 = arith.constant 0 : i32
    %c0_i32_0 = arith.constant 0 : i32
    %c0_i32_1 = arith.constant 0 : i32
    return %c0_i32, %c0_i32_0 : i32, i32
  }
  func.func @transform_3(%arg0: i32) -> (i32, i32, i32) {
    %c0_i32 = arith.constant 0 : i32
    %c0_i32_0 = arith.constant 0 : i32
    %c0_i32_1 = arith.constant 0 : i32
    return %arg0, %c0_i32, %c0_i32_0 : i32, i32, i32
  }
}

</mosaic_0001>

<bundles_post_ra>
// kernel: tpu_custom_call.1
= control target key start
LH: loop header
LB: loop body
LE: loop exit
PB: predicated region body
PF: predicated region fallthrough
CT: control target
= control target key end

     0   :  { %8 = vsyncpa [#allocation3], 0  ;;  %s189_s0 = inlined_call_operand.vmem [shape: f32[4,128], index: 0, kind: input, shape index: {}]   ;;  %s190_s1 = inlined_call_operand.hbm [shape: f32[4,128], index: 1, kind: input, shape index: {}]   ;;  %s191_s2 = inlined_call_operand.vmem [shape: f32[4,1], index: 2, kind: input, shape index: {}]   ;;  %s192_s3 = inlined_call_operand.hbm [shape: f32[1,8,128], index: 3, kind: output, shape index: {}]  }
   0x1   :  { %9 = vsyncpa [#allocation4], 0  ;;  %s154_s12 = smov [#allocation2]  }
   0x2   :  { %s18_s13 = sshll.u32 %s154_s12, 4  ;;  %s19_s13 = int_to_ptr.vmem [resolvable:$true] %s18_s13 }
   0x3   :  { %s118_s14 = scalar_lea.vmem %s19_s13, 64  ;;  %p123_p1 = scmp.lt.s32.totalorder %s19_s13, %s19_s13 }
   0x4   :  { %p119_p0 = scmp.ne.s32.totalorder %s19_s13, %s118_s14  ;;  %p124_p2 = scmp.lt.s32.totalorder %s118_s14, %s118_s14 }
   0x6   :  { %p125_p3 = por %p124_p2, %p123_p1 }
   0x8   :  { %p126_p4 = pnand %p125_p3, %p119_p0 }
   0xa   :  { %129 = shalt.err (!%p126_p4)
}
   0xb   :  { %21 = dma.hbm_to_vmem [thread:$0]  %s190_s1, 64, %s19_s13, [#allocation3]  }
   0xc   :  { %150 = dma.done.wait [#allocation3], 64  }
   0xd   :  { %151 = vsyncadd [#allocation3], 4294967232  ;;  %v155_v0 = vmov 0   ;;  %v29_v1 = vld [vmem:[%s191_s2] sm:$0xf]  ;;  %vm69_vm3 = vcmask 1043456  }
   0xe   :  { %103 = vset.pattern.permute.xlu0 %v155_v0  ;;  %v27_v2 = vld [vmem:[%s189_s0] sm:$0xf]  ;;  %s156_s0 = smov [#allocation5]  }
   0xf   :  { %65 = vperm.xlu0 %103, %v29_v1   ;;  %v30_v3 = vand.u32 2147483647, %v27_v2  ;;  %vm36_vm0 = vcmp.ge.f32.partialorder %v27_v2, 0.0  ;;  %v28_v11 = vld [vmem:[#allocation2] sm:$0xf]  ;;  %v39_v19 = vmax.f32 %v27_v2, 0.0 }
  0x10   :  { %vm56_vm1 = vcmp.eq.f32.partialorder %v28_v11, 1.0  ;;  %v53_v14 = vsub.f32 1.0, %v28_v11  ;;  %v40_v20 = vmul.f32 %v28_v11, %v27_v2  ;;  %v52_v21 = vmul.f32 0.25, %v28_v11  ;;  %s89_s1 = sshll.u32 %s156_s0, 4  ;;  %s90_s1 = int_to_ptr.vmem [resolvable:$true] %s89_s1 }
  0x11   :  { %v31_v4 = vsub.f32 0.0, %v30_v3  ;;  %s130_s21 = scalar_lea.vmem %s90_s1, 128  ;;  %p135_p6 = scmp.lt.s32.totalorder %s90_s1, %s90_s1 }
  0x12   :  { %v54_v22 = vmul.f32 0.75, %v53_v14  ;;  %v41_v26 = vsub.f32 %v39_v19, %v40_v20  ;;  %p131_p5 = scmp.ne.s32.totalorder %s90_s1, %s130_s21  ;;  %p136_p7 = scmp.lt.s32.totalorder %s130_s21, %s130_s21 }
  0x13   :  { %v32_v5 = vmul.f32 1.442695, %v31_v4 }
  0x14   :  { %v55_v27 = vadd.f32 %v54_v22, %v52_v21  ;;  %p137_p8 = por %p136_p7, %p135_p6 }
  0x15   :  { %104 = vpow2.f32 %v32_v5 }
  0x16   :  { %p138_p9 = pnand %p137_p8, %p131_p5 }
  0x22   :  { %v105_v6 = vpop.eup %104 }
  0x23   :  { %v34_v7 = vadd.f32 1.0, %v105_v6  ;;  %v45_v12 = vmul.f32 -0.5, %v105_v6  ;;  %v48_v18 = vand.u32 2147483647, %v105_v6 }
  0x25   :  { %106 = vrcp.f32 %v34_v7  ;;  %v46_v15 = vadd.f32 1.0, %v45_v12  ;;  %vm49_vm2 = vcmp.lt.f32.partialorder %v48_v18, 0.0004427343 }
  0x26   :  { %108 = vlog2.f32 %v34_v7 }
  0x27   :  { %v47_v25 = vmul.f32 %v105_v6, %v46_v15 }
  0x32   :  { %v107_v8 = vpop.eup %106 }
  0x33   :  { %v37_v9 = vmul.f32 %v107_v8, %v105_v6  ;;  %v109_v17 = vpop.eup %108 }
  0x34   :  { %v44_v24 = vmul.f32 0.6931472, %v109_v17 }
  0x35   :  { %v38_v10 = vsel %vm36_vm0, %v107_v8, %v37_v9 }
  0x36   :  { %v57_v13 = vsub.f32 1.0, %v38_v10  ;;  %v50_v29 = vsel %vm49_vm2, %v47_v25, %v44_v24 }
  0x37   :  { %v51_v30 = vadd.f32 %v50_v29, %v41_v26 }
  0x38   :  { %v58_v16 = vsel %vm56_vm1, %v38_v10, %v57_v13 }
  0x39   :  { %v59_v23 = vsub.f32 1.0, %v58_v16 }
  0x3b   :  { %v60_v28 = vmul.f32 %v59_v23, %v59_v23 }
  0x3d   :  { %v61_v31 = vmul.f32 %v60_v28, %v55_v27 }
  0x3f   :  { %v62_v32 = vmul.f32 %v61_v31, %v51_v30 }
  0x8a   :  { %v66_v33 = vpop.permute.xlu0 %65 }
  0x8b   :  { %v68_v34 = vmul.f32 %v66_v33, %v62_v32 }
  0x8d   :  { %v70_v35 = vsel %vm69_vm3, %v68_v34, 0.0 }
  0x8e   :  { %71 = vadd.xlane.f32.xlu0 %v70_v35 }
 0x117   :  { %v72_v36 = vpop.xlane.xlu0 %71 }
 0x118   :  { %v73_v37 = vrot.slane %v72_v36, 4 }
 0x11a   :  { %v74_v38 = vadd.f32 %v73_v37, %v72_v36 }
 0x11c   :  { %v75_v39 = vrot.slane %v74_v38, 2 }
 0x11e   :  { %v76_v40 = vadd.f32 %v75_v39, %v74_v38 }
 0x120   :  { %v77_v41 = vrot.slane %v76_v40, 1 }
 0x122   :  { %v78_v42 = vadd.f32 %v77_v41, %v76_v40 }
 0x124   :  { %98 = vpush %v78_v42 }
 0x155   :  { %s99_s2 = spop %98 }
 0x156   :  { %v80_v43 = vstv %s99_s2 }
 0x157   :  { %82 = vst [vmem:[#allocation5] sm:$0xff] %v80_v43 }
 0x158   :  { %141 = shalt.err (!%p138_p9)
}
 0x159   :  { %92 = dma.vmem_to_hbm [thread:$0]  %s90_s1, 128, %s192_s3, [#allocation4]  }
 0x15a   :  { %152 = dma.done.wait [#allocation4], 128  }
 0x15b   :  { %153 = vsyncadd [#allocation4], 4294967168 }
 0x15c   :  { %96 = vsyncpa [#allocation3], 1 }
 0x15d   :  { %97 = vsyncpa [#allocation4], 1 }

</bundles_post_ra>
